<compile_context>
chip_gen: v5e
topology: v5e:2x2
jax: 0.10.0
libtpu: 0.0.40
codegen_flags: <defaults>
</compile_context>

<pallas_src>
import jax
import jax.numpy as jnp
from jax.experimental import pallas as pl
from jax.experimental.pallas import tpu as pltpu

_SUBLANE = 8
_LANE = 128


def _round_up(x, m):
    return (x + m - 1) // m * m


def _is_v7x():
    try:
        return "v7" in jax.devices()[0].device_kind.lower()
    except Exception:
        return False


def _quant_kernel(fea_ref, const_ref, out_ref):
    # fea_ref   : (block_c, block_k) VMEM tile of the weight
    # const_ref : (block_c, 3) per-row constants [1/alpha, n, alpha/n]
    x = fea_ref[...].astype(jnp.float32)
    inv_alpha = const_ref[:, 0:1]
    n = const_ref[:, 1:2]
    out_scale = const_ref[:, 2:3]
    x_c = jnp.clip(x * inv_alpha, -1.0, 1.0)     # multiply, not divide
    q = jnp.round(x_c * n)
    out_ref[...] = (q * out_scale).astype(out_ref.dtype)


@jax.jit
def weight_quantization_v1(weight, alpha, bit):
    """weight: [C, K]; alpha, bit: [C, 1]. Returns quantized weight (same shape/dtype)."""
    C, K = weight.shape
    out_dtype = weight.dtype
    itemsize = jnp.dtype(weight.dtype).itemsize

    # ---- hoisted per-row constants: O(C) work, done once in the wrapper ----
    alpha_f = alpha.astype(jnp.float32)
    n = jnp.exp2(jnp.round(bit.astype(jnp.float32)) - 1.0) - 1.0
    # NOTE: round(bit) == 1 gives n == 0 (inf/NaN out_scale), same hazard as the
    # canonical formula; no extra guard added to preserve module semantics.
    consts = jnp.concatenate([1.0 / alpha_f, n, alpha_f / n], axis=1)  # (C, 3) f32

    # ---- block sizing: byte budget, lane-dense, (8,128)-aligned ----
    target_bytes = (4 << 20) if _is_v7x() else (2 << 20)
    # Widest lane extent that still leaves >= 8 rows inside the budget.
    max_block_k = max(_LANE, (target_bytes // (_SUBLANE * itemsize)) // _LANE * _LANE)
    block_k = min(_round_up(K, _LANE), max_block_k)
    max_block_c = max(_SUBLANE,
                      (target_bytes // (block_k * itemsize)) // _SUBLANE * _SUBLANE)
    block_c = min(_round_up(C, _SUBLANE), max_block_c)

    nc = pl.cdiv(C, block_c)
    nk = pl.cdiv(K, block_k)

    # ---- grid ordering: longer axis first so megacore (v7x) always has >=2
    #      iterations on the leading sharded axis whenever possible ----
    if nk > nc:
        grid = (nk, nc)
        w_map = lambda j, i: (i, j)
        c_map = lambda j, i: (i, 0)
    else:
        grid = (nc, nk)
        w_map = lambda i, j: (i, j)
        c_map = lambda i, j: (i, 0)

    return pl.pallas_call(
        _quant_kernel,
        out_shape=jax.ShapeDtypeStruct((C, K), out_dtype),
        grid_spec=pltpu.PrefetchScalarGridSpec(
            num_scalar_prefetch=0,
            grid=grid,
            in_specs=[
                pl.BlockSpec((block_c, block_k), w_map),   # weight tile
                pl.BlockSpec((block_c, 3), c_map),         # packed per-row consts
            ],
            out_specs=pl.BlockSpec((block_c, block_k), w_map),
        ),
        compiler_params=pltpu.CompilerParams(
            dimension_semantics=("parallel", "parallel"),
            vmem_limit_bytes=32 << 20,   # covers 4 MiB-block config on v7x; harmless elsewhere
        ),
    )(weight, consts)


def reference(weight, alpha, bit):
    """Module-form forward (divides), for verification."""
    alpha = alpha.astype(jnp.float32)
    n = jnp.exp2(jnp.round(bit.astype(jnp.float32)) - 1.0) - 1.0
    x_c = jnp.clip(weight.astype(jnp.float32) / alpha, -1.0, 1.0)
    return (jnp.round(x_c * n) / n * alpha).astype(weight.dtype)


if __name__ == "__main__":
    # Module hyper-parameters (deterministic, small).
    in_channels = 16
    out_channels = 8
    init_bit = 4
    alpha_init, alpha_std = 0.1, 0.1

    key = jax.random.PRNGKey(0)
    k_w, k_alpha = jax.random.split(key)

    # Flattened conv-like weight [out_channels, in_channels*3*3]; K = 144 is
    # deliberately NOT a multiple of 128 to exercise the ragged-block path
    # (no wrapper padding / slicing anymore).
    K = in_channels * 3 * 3
    weight = jax.random.normal(k_w, (out_channels, K), dtype=jnp.float32) * 0.5

    # alpha = |Normal(alpha_init, alpha_std)|, shape [C, 1]; bit = const, [C, 1]
    alpha = jnp.abs(alpha_init + alpha_std *
                    jax.random.normal(k_alpha, (out_channels, 1), dtype=jnp.float32))
    bit = jnp.full((out_channels, 1), float(init_bit), dtype=jnp.float32)

    out = weight_quantization_v1(weight, alpha, bit)
    jax.block_until_ready(out)

    ref = reference(weight, alpha, bit)
    assert out.shape == weight.shape and out.dtype == weight.dtype

    # The kernel folds exact 1/alpha and alpha/n into per-row multipliers; this
    # can only flip a rounding decision when weight/alpha lands within ~1 ulp of
    # an exact .5 boundary, so require near-universal tight agreement and bound
    # any stray difference by a single quantization step.
    n = jnp.exp2(jnp.round(bit) - 1.0) - 1.0
    step = jnp.max(alpha / n)
    diff = jnp.abs(out.astype(jnp.float32) - ref.astype(jnp.float32))
    frac_tight = jnp.mean((diff <= 1e-5).astype(jnp.float32))
    assert frac_tight >= 0.999, f"too many mismatches vs reference ({frac_tight})"
    assert jnp.max(diff) <= step * 1.001 + 1e-6, "mismatch exceeds one quant step"

    print("KERNEL_OK")
</pallas_src>

<mosaic_0001>
module attributes {stable_mosaic.version = 11 : i64} {
  func.func @_quant_kernel(%arg0: i32, %arg1: i32, %arg2: memref<8x256xf32, #tpu.memory_space<vmem>>, %arg3: memref<8x3xf32, #tpu.memory_space<vmem>>, %arg4: memref<8x256xf32, #tpu.memory_space<vmem>>) attributes {dimension_semantics = [#tpu.dimension_semantics<parallel>, #tpu.dimension_semantics<parallel>], iteration_bounds = array<i64: 1, 1>, scalar_prefetch = 0 : i64, scratch_operands = 0 : i64, tpu.core_type = #tpu.core_type<tc>, window_params = [{transform_indices = @transform_0, window_bounds = array<i64: 8, 256>}, {transform_indices = @transform_1, window_bounds = array<i64: 8, 3>}, {transform_indices = @transform_2, window_bounds = array<i64: 8, 256>}]} {
    %c0 = arith.constant 0 : index
    %c0_0 = arith.constant 0 : index
    %0 = vector.load %arg2[%c0, %c0_0] : memref<8x256xf32, #tpu.memory_space<vmem>>, vector<8x256xf32>
    %c0_1 = arith.constant 0 : index
    %c0_2 = arith.constant 0 : index
    %1 = vector.load %arg3[%c0_1, %c0_2] : memref<8x3xf32, #tpu.memory_space<vmem>>, vector<8x1xf32>
    %c0_3 = arith.constant 0 : index
    %c1 = arith.constant 1 : index
    %2 = vector.load %arg3[%c0_3, %c1] : memref<8x3xf32, #tpu.memory_space<vmem>>, vector<8x1xf32>
    %c0_4 = arith.constant 0 : index
    %c2 = arith.constant 2 : index
    %3 = vector.load %arg3[%c0_4, %c2] : memref<8x3xf32, #tpu.memory_space<vmem>>, vector<8x1xf32>
    %4 = vector.broadcast %1 : vector<8x1xf32> to vector<8x256xf32>
    %5 = arith.mulf %0, %4 : vector<8x256xf32>
    %cst = arith.constant -1.000000e+00 : f32
    %cst_5 = arith.constant 1.000000e+00 : f32
    %6 = vector.broadcast %cst : f32 to vector<8x256xf32>
    %7 = arith.maximumf %6, %5 : vector<8x256xf32>
    %8 = vector.broadcast %cst_5 : f32 to vector<8x256xf32>
    %9 = arith.minimumf %8, %7 : vector<8x256xf32>
    %10 = vector.broadcast %2 : vector<8x1xf32> to vector<8x256xf32>
    %11 = arith.mulf %9, %10 : vector<8x256xf32>
    %12 = math.roundeven %11 : vector<8x256xf32>
    %13 = vector.broadcast %3 : vector<8x1xf32> to vector<8x256xf32>
    %14 = arith.mulf %12, %13 : vector<8x256xf32>
    %c0_6 = arith.constant 0 : index
    %c0_7 = arith.constant 0 : index
    %15 = vector.load %arg4[%c0_6, %c0_7] : memref<8x256xf32, #tpu.memory_space<vmem>>, vector<8x256xf32>
    tpu.vector_store %arg4[%c0_6, %c0_7], %14 {strides = array<i32>} : memref<8x256xf32, #tpu.memory_space<vmem>>, vector<8x256xf32>,
    return
  }
  func.func @transform_0(%arg0: i32, %arg1: i32) -> (i32, i32) {
    %c0_i32 = arith.constant 0 : i32
    return %arg0, %arg1 : i32, i32
  }
  func.func @transform_1(%arg0: i32, %arg1: i32) -> (i32, i32) {
    %c0_i32 = arith.constant 0 : i32
    %c0_i32_0 = arith.constant 0 : i32
    return %arg0, %c0_i32 : i32, i32
  }
  func.func @transform_2(%arg0: i32, %arg1: i32) -> (i32, i32) {
    %c0_i32 = arith.constant 0 : i32
    return %arg0, %arg1 : i32, i32
  }
}

</mosaic_0001>

<bundles_post_ra>
// kernel: weight_quantization_v1.1
= control target key start
LH: loop header
LB: loop body
LE: loop exit
PB: predicated region body
PF: predicated region fallthrough
CT: control target
= control target key end

     0   :  { %s141_s0 = inlined_call_operand.vmem [shape: f32[8,144], index: 0, kind: input, shape index: {}]   ;;  %s142_s1 = inlined_call_operand.vmem [shape: f32[8,3], index: 1, kind: input, shape index: {}]   ;;  %s143_s2 = inlined_call_operand.hbm [shape: f32[8,144], index: 2, kind: output, shape index: {}]  }
   0x1   :  { %v14_v0 = vld [vmem:[%s142_s1] sm:$0xff] }
   0x2   :  { %7 = vsyncpa [#allocation3], 0  ;;  %v110_v1 = vmov 0   ;;  %v111_v2 = vmov 2   ;;  %v112_v3 = vmov 1   ;;  %v12_v5 = vld [vmem:[%s141_s0] sm:$0xff] }
   0x3   :  { %80 = vset.pattern.permute.xlu0 %v110_v1  ;;  %82 = vset.pattern.permute.xlu1 %v111_v2  ;;  %v13_v6 = vld [vmem:[%s141_s0 + $0x8] sm:$0xff]  ;;  %s113_s0 = smov [#allocation2]   ;;  %s49_s17 = sshll.u32 %s143_s2, 4  ;;  %s50_s17 = int_to_ptr.hbm [resolvable:$true] %s49_s17 }
   0x4   :  { %17 = vperm.xlu0 %80, %v14_v0   ;;  %35 = vperm.xlu1 %82, %v14_v0   ;;  %s47_s1 = sshll.u32 %s113_s0, 4  ;;  %s48_s1 = int_to_ptr.vmem [resolvable:$true] %s47_s1 }
   0xc   :  { %81 = vset.pattern.permute.xlu0 %v112_v3 }
   0xd   :  { %27 = vperm.xlu0 %81, %v14_v0  }
  0x15   :  { %83 = vset.pattern.permute.xlu0 %v111_v2 }
  0x76   :  { %v18_v4 = vpop.permute.xlu0 %17  ;;  %v36_v24 = vpop.permute.xlu1 %35 }
  0x77   :  { %v20_v7 = vmul.f32 %v18_v4, %v12_v5  ;;  %v21_v8 = vmul.f32 %v18_v4, %v13_v6 }
  0x79   :  { %v58_v9 = vclamps-f32 %v20_v7, 1.0  ;;  %v59_v10 = vclamps-f32 %v21_v8, 1.0 }
  0x7f   :  { %v28_v11 = vpop.permute.xlu0 %27 }
  0x80   :  { %v30_v12 = vmul.f32 %v58_v9, %v28_v11  ;;  %v31_v13 = vmul.f32 %v59_v10, %v28_v11 }
  0x82   :  { %v62_v14 = vcvt.f32.s32 %v30_v12  ;;  %v70_v15 = vcvt.f32.s32 %v31_v13  ;;  %v60_v18 = vand.u32 2147483647, %v30_v12  ;;  %v68_v19 = vand.u32 2147483647, %v31_v13 }
  0x83   :  { %v65_v21 = vand.u32 2147483648, %v30_v12  ;;  %v73_v23 = vand.u32 2147483648, %v31_v13 }
  0x84   :  { %v63_v16 = vcvt.s32.f32 %v62_v14  ;;  %v71_v17 = vcvt.s32.f32 %v70_v15  ;;  %vm61_vm0 = vcmp.lt.f32.partialorder %v60_v18, 8388608.0  ;;  %vm69_vm1 = vcmp.lt.f32.partialorder %v68_v19, 8388608.0 }
  0x86   :  { %v64_v20 = vand.u32 2147483647, %v63_v16  ;;  %v72_v22 = vand.u32 2147483647, %v71_v17 }
  0x88   :  { %v66_v25 = vor.u32 %v65_v21, %v64_v20  ;;  %v74_v26 = vor.u32 %v73_v23, %v72_v22 }
  0x8a   :  { %v67_v27 = vsel %vm61_vm0, %v66_v25, %v30_v12  ;;  %v75_v28 = vsel %vm69_vm1, %v74_v26, %v31_v13 }
  0x8b   :  { %v38_v29 = vmul.f32 %v67_v27, %v36_v24  ;;  %v39_v30 = vmul.f32 %v75_v28, %v36_v24 }
  0x8d   :  { %40 = vst [vmem:[#allocation2] sm:$0xff] %v38_v29 }
  0x8e   :  { %41 = vst [vmem:[#allocation2 + $0x8] sm:$0xff] %v39_v30 }
  0x8f   :  { %52 = dma.vmem_to_hbm [thread:$0]  %s48_s1, 256, %s50_s17, [#allocation3]  }
  0x90   :  { %108 = dma.done.wait [#allocation3], 256  }
  0x91   :  { %109 = vsyncadd [#allocation3], 4294967040 }
  0x92   :  { %57 = vsyncpa [#allocation3], 1 }

</bundles_post_ra>
